<compile_context>
chip_gen: v5e
topology: v5e:2x2
jax: 0.10.0
libtpu: 0.0.40
codegen_flags: <defaults>
</compile_context>

<pallas_src>
import functools

import jax
import jax.numpy as jnp
from jax.experimental import pallas as pl
from jax.experimental.pallas import tpu as pltpu


def _round_up(x, m):
    return ((x + m - 1) // m) * m


def _fused_encoder_kernel(alpha_ref,
                          xn_ref, w1n_ref, b1n_ref, w2n_ref, b2n_ref,
                          xe_ref, w1e_ref, b1e_ref, w2e_ref, b2e_ref,
                          on_ref, oe_ref, *, n_node_tiles):
    # Grid: (flattened row-tile axis,). Steps [0, n_node_tiles) -> node encoder,
    # the remaining steps -> edge encoder. Weights/biases are resident (constant index maps).
    i = pl.program_id(0)

    def mlp(x_ref, w1_ref, b1_ref, w2_ref, b2_ref, alpha, o_ref):
        # bf16 MXU operands, f32 accumulation; bias add + PReLU stay f32.
        h = jnp.dot(x_ref[...].astype(jnp.bfloat16), w1_ref[...],
                    preferred_element_type=jnp.float32)
        h = h + b1_ref[...]
        h = jnp.where(h >= 0.0, h, alpha * h)          # PReLU (single shared parameter)
        y = jnp.dot(h.astype(jnp.bfloat16), w2_ref[...],
                    preferred_element_type=jnp.float32)
        o_ref[...] = (y + b2_ref[...]).astype(o_ref.dtype)

    @pl.when(i < n_node_tiles)
    def _():
        mlp(xn_ref, w1n_ref, b1n_ref, w2n_ref, b2n_ref, alpha_ref[0], on_ref)

    @pl.when(i >= n_node_tiles)
    def _():
        mlp(xe_ref, w1e_ref, b1e_ref, w2e_ref, b2e_ref, alpha_ref[1], oe_ref)


def fused_encoder_mlp(packed, x_node, x_edge, *, tile_rows=1024,
                      out_dtype=jnp.bfloat16):
    """Runs both (Linear -> PReLU -> Linear) encoders in one Pallas call.

    Returns (node_out, edge_out) with shapes (n_node, h_pad) / (n_edge, h_pad) in
    `out_dtype`; padded hidden columns [n_hidden:h_pad] are exactly zero.
    """
    h_pad = packed["h_pad"]
    n_node, f_node = x_node.shape
    n_edge, f_edge = x_edge.shape

    tile_cap = _round_up(max(int(tile_rows), 16), 16)

    def pick_tile(n):
        # 16-aligned (bf16 packs 2 rows / sublane), clipped to the requested cap.
        return min(_round_up(max(n, 1), 16), tile_cap)

    tn = pick_tile(n_node)
    te = pick_tile(n_edge)
    n_node_tiles = pl.cdiv(n_node, tn)
    n_edge_tiles = pl.cdiv(n_edge, te)
    grid = (n_node_tiles + n_edge_tiles,)

    last_node_tile = n_node_tiles - 1
    # During the "other" encoder's steps the index is frozen (constant), so the block is
    # neither re-fetched (inputs) nor prematurely/incorrectly written back (outputs).
    node_rows = lambda i: (jnp.minimum(i, last_node_tile), 0)
    edge_rows = lambda i: (jnp.maximum(i - n_node_tiles, 0), 0)
    resident = lambda i: (0, 0)

    kernel = functools.partial(_fused_encoder_kernel, n_node_tiles=n_node_tiles)

    return pl.pallas_call(
        kernel,
        out_shape=(jax.ShapeDtypeStruct((n_node, h_pad), out_dtype),
                   jax.ShapeDtypeStruct((n_edge, h_pad), out_dtype)),
        grid=grid,
        in_specs=[
            pl.BlockSpec(memory_space=pltpu.MemorySpace.SMEM),    # alpha (2,) f32
            pl.BlockSpec((tn, f_node), node_rows),                # x_node row tile (f32)
            pl.BlockSpec((f_node, h_pad), resident),              # node W1 (bf16, resident)
            pl.BlockSpec((1, h_pad), resident),                   # node b1 (f32)
            pl.BlockSpec((h_pad, h_pad), resident),               # node W2 (bf16, resident)
            pl.BlockSpec((1, h_pad), resident),                   # node b2 (f32)
            pl.BlockSpec((te, f_edge), edge_rows),                # x_edge row tile (f32)
            pl.BlockSpec((f_edge, h_pad), resident),              # edge W1 (bf16, resident)
            pl.BlockSpec((1, h_pad), resident),                   # edge b1 (f32)
            pl.BlockSpec((h_pad, h_pad), resident),               # edge W2 (bf16, resident)
            pl.BlockSpec((1, h_pad), resident),                   # edge b2 (f32)
        ],
        out_specs=(pl.BlockSpec((tn, h_pad), node_rows),
                   pl.BlockSpec((te, h_pad), edge_rows)),
        # "arbitrary": frozen output indices rely on a single sequential sweep; sharding this
        # axis across v7x's two TensorCores would be unsafe (and the kernel is byte-bound).
        compiler_params=pltpu.CompilerParams(dimension_semantics=("arbitrary",)),
    )(packed["alpha"],
      x_node, packed["node_w1"], packed["node_b1"], packed["node_w2"], packed["node_b2"],
      x_edge, packed["edge_w1"], packed["edge_b1"], packed["edge_w2"], packed["edge_b2"])


def init_encoder_params(key, n_atom_feats, n_bond_feats, n_hidden):
    """Deterministic synthetic parameters matching the shapes of Encoder.__init__."""
    ks = jax.random.split(key, 8)

    def linear(kw, kb, fan_in, fan_out):
        # uniform(-1/sqrt(fan_in), 1/sqrt(fan_in)) like torch.nn.Linear default
        bound = 1.0 / jnp.sqrt(jnp.float32(fan_in))
        w = jax.random.uniform(kw, (fan_in, fan_out), jnp.float32, -bound, bound)
        b = jax.random.uniform(kb, (fan_out,), jnp.float32, -bound, bound)
        return w, b

    node_w1, node_b1 = linear(ks[0], ks[1], n_atom_feats, n_hidden)
    node_w2, node_b2 = linear(ks[2], ks[3], n_hidden, n_hidden)
    edge_w1, edge_b1 = linear(ks[4], ks[5], n_bond_feats, n_hidden)
    edge_w2, edge_b2 = linear(ks[6], ks[7], n_hidden, n_hidden)
    # nn.PReLU() default: single shared parameter initialized to 0.25
    node_alpha = jnp.asarray(0.25, jnp.float32)
    edge_alpha = jnp.asarray(0.25, jnp.float32)
    return {
        "node": (node_w1, node_b1, node_alpha, node_w2, node_b2),
        "edge": (edge_w1, edge_b1, edge_alpha, edge_w2, edge_b2),
    }


def pack_encoder_params(params, n_hidden):
    """One-time packing: pad hidden dim to 128 lanes (lane-dense, unmasked output stores),
    cast MXU operands to bf16 (biases / PReLU alpha stay f32). Feature dims are NOT padded —
    the weight/input blocks use the full array extent on that axis."""
    h_pad = _round_up(n_hidden, 128)

    def pad_to(a, shape):
        return jnp.zeros(shape, jnp.float32).at[:a.shape[0], :a.shape[1]].set(a)

    nw1, nb1, na, nw2, nb2 = params["node"]
    ew1, eb1, ea, ew2, eb2 = params["edge"]
    return {
        "node_w1": pad_to(nw1, (nw1.shape[0], h_pad)).astype(jnp.bfloat16),
        "node_b1": pad_to(nb1[None, :], (1, h_pad)),
        "node_w2": pad_to(nw2, (h_pad, h_pad)).astype(jnp.bfloat16),
        "node_b2": pad_to(nb2[None, :], (1, h_pad)),
        "edge_w1": pad_to(ew1, (ew1.shape[0], h_pad)).astype(jnp.bfloat16),
        "edge_b1": pad_to(eb1[None, :], (1, h_pad)),
        "edge_w2": pad_to(ew2, (h_pad, h_pad)).astype(jnp.bfloat16),
        "edge_b2": pad_to(eb2[None, :], (1, h_pad)),
        "alpha": jnp.stack([na, ea]).astype(jnp.float32),      # (2,) SMEM scalar input
        "h_pad": h_pad,
        "n_hidden": n_hidden,
    }


def encoder_forward(packed, x, edge_attr, batch, energies, num_graphs, *,
                    tile_rows=1024, out_dtype=jnp.bfloat16, trim_hidden=True):
    """Forward pass matching Encoder.forward semantics.

    trim_hidden=False returns the lane-dense (rows, h_pad) slabs (padded hidden columns are
    zero) and avoids the non-lane-dense :n_hidden slice — preferred when the consumer can
    operate on the padded hidden dim.
    """
    x_out, edge_out = fused_encoder_mlp(packed, x, edge_attr,
                                        tile_rows=tile_rows, out_dtype=out_dtype)
    n_hidden = packed["n_hidden"]
    if trim_hidden and n_hidden != packed["h_pad"]:
        x_out = x_out[:, :n_hidden]
        edge_out = edge_out[:, :n_hidden]
    # energies.reshape(E0, 1, E1).expand(E0, num_graphs, E1) -> broadcast, no compute
    e0, e1 = energies.shape
    energies_out = jnp.broadcast_to(energies[:, None, :], (e0, num_graphs, e1))
    return x_out, edge_out, energies_out


def reference_forward(params, x, edge_attr, batch, energies, num_graphs):
    """Pure-JAX reference with the same bf16-operand / f32-accumulate precision as the kernel."""
    def r(a):
        return a.astype(jnp.bfloat16).astype(jnp.float32)

    def mlp(x, w1, b1, a, w2, b2):
        h = jnp.dot(r(x), r(w1), precision=jax.lax.Precision.HIGHEST) + b1
        h = jnp.where(h >= 0.0, h, a * h)
        return jnp.dot(r(h), r(w2), precision=jax.lax.Precision.HIGHEST) + b2

    nw1, nb1, na, nw2, nb2 = params["node"]
    ew1, eb1, ea, ew2, eb2 = params["edge"]
    x_out = mlp(x, nw1, nb1, na, nw2, nb2)
    edge_out = mlp(edge_attr, ew1, eb1, ea, ew2, eb2)
    e0, e1 = energies.shape
    energies_out = jnp.broadcast_to(energies[:, None, :], (e0, num_graphs, e1))
    return x_out, edge_out, energies_out


def _run_case(key, *, n_atom_feats, n_bond_feats, n_hidden, n_nodes, n_edges,
              n_energy, graph_sizes, tile_rows):
    k_param, k_x, k_e, k_en = jax.random.split(key, 4)

    x = jax.random.normal(k_x, (n_nodes, n_atom_feats), jnp.float32)
    edge_attr = jax.random.normal(k_e, (n_edges, n_bond_feats), jnp.float32)
    batch = jnp.concatenate(
        [jnp.full((s,), i, jnp.int32) for i, s in enumerate(graph_sizes)])
    num_graphs = int(jnp.unique(batch).shape[0])       # len(batch.unique())
    energies = jax.random.normal(k_en, (2, n_energy), jnp.float32)

    params = init_encoder_params(k_param, n_atom_feats, n_bond_feats, n_hidden)
    packed = pack_encoder_params(params, n_hidden)

    x_out, edge_out, energies_out = encoder_forward(
        packed, x, edge_attr, batch, energies, num_graphs, tile_rows=tile_rows)
    jax.block_until_ready((x_out, edge_out, energies_out))

    # correctness check vs pure-JAX reference (same mixed precision; bf16 output rounding)
    x_ref, e_ref, en_ref = reference_forward(
        params, x, edge_attr, batch, energies, num_graphs)
    assert x_out.shape == (n_nodes, n_hidden)
    assert edge_out.shape == (n_edges, n_hidden)
    assert energies_out.shape == (2, num_graphs, n_energy)
    assert jnp.allclose(x_out.astype(jnp.float32), x_ref, atol=2e-2, rtol=2e-2)
    assert jnp.allclose(edge_out.astype(jnp.float32), e_ref, atol=2e-2, rtol=2e-2)
    assert jnp.allclose(energies_out, en_ref)


if __name__ == "__main__":
    key = jax.random.PRNGKey(0)
    k_small, k_large = jax.random.split(key)

    # Small case: module-typical toy shapes (single tile per encoder).
    _run_case(k_small, n_atom_feats=16, n_bond_feats=8, n_hidden=32,
              n_nodes=10, n_edges=14, n_energy=12, graph_sizes=(6, 4),
              tile_rows=1024)

    # Larger case: exercises the flattened multi-tile grid, ragged last tiles and the
    # hidden-dim trim (n_edges >> n_nodes, like real phonon graphs).
    _run_case(k_large, n_atom_feats=16, n_bond_feats=8, n_hidden=64,
              n_nodes=200, n_edges=1500, n_energy=12, graph_sizes=(120, 80),
              tile_rows=256)

    print("KERNEL_OK")
</pallas_src>

<mosaic_0001>
module attributes {stable_mosaic.version = 11 : i64} {
  func.func @_fused_encoder_kernel(%arg0: i32, %arg1: memref<2xf32, #tpu.memory_space<smem>>, %arg2: memref<16x16xf32, #tpu.memory_space<vmem>>, %arg3: memref<16x128xbf16, #tpu.memory_space<vmem>>, %arg4: memref<1x128xf32, #tpu.memory_space<vmem>>, %arg5: memref<128x128xbf16, #tpu.memory_space<vmem>>, %arg6: memref<1x128xf32, #tpu.memory_space<vmem>>, %arg7: memref<16x8xf32, #tpu.memory_space<vmem>>, %arg8: memref<8x128xbf16, #tpu.memory_space<vmem>>, %arg9: memref<1x128xf32, #tpu.memory_space<vmem>>, %arg10: memref<128x128xbf16, #tpu.memory_space<vmem>>, %arg11: memref<1x128xf32, #tpu.memory_space<vmem>>, %arg12: memref<16x128xbf16, #tpu.memory_space<vmem>>, %arg13: memref<16x128xbf16, #tpu.memory_space<vmem>>) attributes {dimension_semantics = [#tpu.dimension_semantics<arbitrary>], iteration_bounds = array<i64: 2>, scalar_prefetch = 0 : i64, scratch_operands = 0 : i64, tpu.core_type = #tpu.core_type<tc>, window_params = [{transform_indices = @transform_0, window_bounds = array<i64: 2>}, {transform_indices = @transform_1, window_bounds = array<i64: 16, 16>}, {pipeline_mode = #tpu.pipeline_mode<synchronous>, transform_indices = @transform_2, window_bounds = array<i64: 16, 128>}, {pipeline_mode = #tpu.pipeline_mode<synchronous>, transform_indices = @transform_3, window_bounds = array<i64: 1, 128>}, {pipeline_mode = #tpu.pipeline_mode<synchronous>, transform_indices = @transform_4, window_bounds = array<i64: 128, 128>}, {pipeline_mode = #tpu.pipeline_mode<synchronous>, transform_indices = @transform_5, window_bounds = array<i64: 1, 128>}, {transform_indices = @transform_6, window_bounds = array<i64: 16, 8>}, {pipeline_mode = #tpu.pipeline_mode<synchronous>, transform_indices = @transform_7, window_bounds = array<i64: 8, 128>}, {pipeline_mode = #tpu.pipeline_mode<synchronous>, transform_indices = @transform_8, window_bounds = array<i64: 1, 128>}, {pipeline_mode = #tpu.pipeline_mode<synchronous>, transform_indices = @transform_9, window_bounds = array<i64: 128, 128>}, {pipeline_mode = #tpu.pipeline_mode<synchronous>, transform_indices = @transform_10, window_bounds = array<i64: 1, 128>}, {transform_indices = @transform_11, window_bounds = array<i64: 16, 128>}, {transform_indices = @transform_12, window_bounds = array<i64: 16, 128>}]} {
    %c1_i32 = arith.constant 1 : i32
    %0 = arith.cmpi slt, %arg0, %c1_i32 : i32
    %1 = arith.extui %0 : i1 to i32
    %c0_i32 = arith.constant 0 : i32
    %2 = arith.cmpi ne, %1, %c0_i32 : i32
    scf.if %2 {
      %c0 = arith.constant 0 : index
      %6 = memref.load %arg1[%c0] : memref<2xf32, #tpu.memory_space<smem>>
      %c0_2 = arith.constant 0 : index
      %c0_3 = arith.constant 0 : index
      %7 = vector.load %arg2[%c0_2, %c0_3] : memref<16x16xf32, #tpu.memory_space<vmem>>, vector<16x16xf32>
      %8 = arith.truncf %7 : vector<16x16xf32> to vector<16x16xbf16>
      %c0_4 = arith.constant 0 : index
      %c0_5 = arith.constant 0 : index
      %9 = vector.load %arg3[%c0_4, %c0_5] : memref<16x128xbf16, #tpu.memory_space<vmem>>, vector<16x128xbf16>
      %cst = arith.constant dense<0.000000e+00> : vector<16x128xf32>
      %10 = tpu.matmul %8, %9, %cst {dimension_numbers = #tpu.dot_dimension_numbers<[1], [0], [0], [1], [0, 0, 1, 1], [], []>} : vector<16x16xbf16>, vector<16x128xbf16>, vector<16x128xf32> -> vector<16x128xf32>
      %c0_6 = arith.constant 0 : index
      %c0_7 = arith.constant 0 : index
      %11 = vector.load %arg4[%c0_6, %c0_7] : memref<1x128xf32, #tpu.memory_space<vmem>>, vector<1x128xf32>
      %12 = vector.broadcast %11 : vector<1x128xf32> to vector<16x128xf32>
      %13 = arith.addf %10, %12 : vector<16x128xf32>
      %cst_8 = arith.constant 0.000000e+00 : f32
      %14 = vector.broadcast %cst_8 : f32 to vector<16x128xf32>
      %15 = arith.cmpf oge, %13, %14 : vector<16x128xf32>
      %16 = vector.broadcast %6 : f32 to vector<16x128xf32>
      %17 = arith.mulf %16, %13 : vector<16x128xf32>
      %18 = arith.select %15, %13, %17 : vector<16x128xi1>, vector<16x128xf32>
      %19 = arith.truncf %18 : vector<16x128xf32> to vector<16x128xbf16>
      %c0_9 = arith.constant 0 : index
      %c0_10 = arith.constant 0 : index
      %20 = vector.load %arg5[%c0_9, %c0_10] : memref<128x128xbf16, #tpu.memory_space<vmem>>, vector<128x128xbf16>
      %cst_11 = arith.constant dense<0.000000e+00> : vector<16x128xf32>
      %21 = tpu.matmul %19, %20, %cst_11 {dimension_numbers = #tpu.dot_dimension_numbers<[1], [0], [0], [1], [0, 0, 1, 1], [], []>} : vector<16x128xbf16>, vector<128x128xbf16>, vector<16x128xf32> -> vector<16x128xf32>
      %c0_12 = arith.constant 0 : index
      %c0_13 = arith.constant 0 : index
      %22 = vector.load %arg6[%c0_12, %c0_13] : memref<1x128xf32, #tpu.memory_space<vmem>>, vector<1x128xf32>
      %23 = vector.broadcast %22 : vector<1x128xf32> to vector<16x128xf32>
      %24 = arith.addf %21, %23 : vector<16x128xf32>
      %25 = arith.truncf %24 : vector<16x128xf32> to vector<16x128xbf16>
      %c0_14 = arith.constant 0 : index
      %c0_15 = arith.constant 0 : index
      %26 = vector.load %arg12[%c0_14, %c0_15] : memref<16x128xbf16, #tpu.memory_space<vmem>>, vector<16x128xbf16>
      tpu.vector_store %arg12[%c0_14, %c0_15], %25 {strides = array<i32>} : memref<16x128xbf16, #tpu.memory_space<vmem>>, vector<16x128xbf16>,
    } else {
    }
    %c1_i32_0 = arith.constant 1 : i32
    %3 = arith.cmpi sge, %arg0, %c1_i32_0 : i32
    %4 = arith.extui %3 : i1 to i32
    %c0_i32_1 = arith.constant 0 : i32
    %5 = arith.cmpi ne, %4, %c0_i32_1 : i32
    scf.if %5 {
      %c1 = arith.constant 1 : index
      %6 = memref.load %arg1[%c1] : memref<2xf32, #tpu.memory_space<smem>>
      %c0 = arith.constant 0 : index
      %c0_2 = arith.constant 0 : index
      %7 = vector.load %arg7[%c0, %c0_2] : memref<16x8xf32, #tpu.memory_space<vmem>>, vector<16x8xf32>
      %8 = arith.truncf %7 : vector<16x8xf32> to vector<16x8xbf16>
      %c0_3 = arith.constant 0 : index
      %c0_4 = arith.constant 0 : index
      %9 = vector.load %arg8[%c0_3, %c0_4] : memref<8x128xbf16, #tpu.memory_space<vmem>>, vector<8x128xbf16>
      %cst = arith.constant dense<0.000000e+00> : vector<16x128xf32>
      %10 = tpu.matmul %8, %9, %cst {dimension_numbers = #tpu.dot_dimension_numbers<[1], [0], [0], [1], [0, 0, 1, 1], [], []>} : vector<16x8xbf16>, vector<8x128xbf16>, vector<16x128xf32> -> vector<16x128xf32>
      %c0_5 = arith.constant 0 : index
      %c0_6 = arith.constant 0 : index
      %11 = vector.load %arg9[%c0_5, %c0_6] : memref<1x128xf32, #tpu.memory_space<vmem>>, vector<1x128xf32>
      %12 = vector.broadcast %11 : vector<1x128xf32> to vector<16x128xf32>
      %13 = arith.addf %10, %12 : vector<16x128xf32>
      %cst_7 = arith.constant 0.000000e+00 : f32
      %14 = vector.broadcast %cst_7 : f32 to vector<16x128xf32>
      %15 = arith.cmpf oge, %13, %14 : vector<16x128xf32>
      %16 = vector.broadcast %6 : f32 to vector<16x128xf32>
      %17 = arith.mulf %16, %13 : vector<16x128xf32>
      %18 = arith.select %15, %13, %17 : vector<16x128xi1>, vector<16x128xf32>
      %19 = arith.truncf %18 : vector<16x128xf32> to vector<16x128xbf16>
      %c0_8 = arith.constant 0 : index
      %c0_9 = arith.constant 0 : index
      %20 = vector.load %arg10[%c0_8, %c0_9] : memref<128x128xbf16, #tpu.memory_space<vmem>>, vector<128x128xbf16>
      %cst_10 = arith.constant dense<0.000000e+00> : vector<16x128xf32>
      %21 = tpu.matmul %19, %20, %cst_10 {dimension_numbers = #tpu.dot_dimension_numbers<[1], [0], [0], [1], [0, 0, 1, 1], [], []>} : vector<16x128xbf16>, vector<128x128xbf16>, vector<16x128xf32> -> vector<16x128xf32>
      %c0_11 = arith.constant 0 : index
      %c0_12 = arith.constant 0 : index
      %22 = vector.load %arg11[%c0_11, %c0_12] : memref<1x128xf32, #tpu.memory_space<vmem>>, vector<1x128xf32>
      %23 = vector.broadcast %22 : vector<1x128xf32> to vector<16x128xf32>
      %24 = arith.addf %21, %23 : vector<16x128xf32>
      %25 = arith.truncf %24 : vector<16x128xf32> to vector<16x128xbf16>
      %c0_13 = arith.constant 0 : index
      %c0_14 = arith.constant 0 : index
      %26 = vector.load %arg13[%c0_13, %c0_14] : memref<16x128xbf16, #tpu.memory_space<vmem>>, vector<16x128xbf16>
      tpu.vector_store %arg13[%c0_13, %c0_14], %25 {strides = array<i32>} : memref<16x128xbf16, #tpu.memory_space<vmem>>, vector<16x128xbf16>,
    } else {
    }
    return
  }
  func.func @transform_0(%arg0: i32) -> i32 {
    %c0_i32 = arith.constant 0 : i32
    %c0_i32_0 = arith.constant 0 : i32
    return %c0_i32 : i32
  }
  func.func @transform_1(%arg0: i32) -> (i32, i32) {
    %c0_i32 = arith.constant 0 : i32
    %0 = arith.minsi %arg0, %c0_i32 : i32
    %c0_i32_0 = arith.constant 0 : i32
    %c0_i32_1 = arith.constant 0 : i32
    return %0, %c0_i32_0 : i32, i32
  }
  func.func @transform_2(%arg0: i32) -> (i32, i32) {
    %c0_i32 = arith.constant 0 : i32
    %c0_i32_0 = arith.constant 0 : i32
    %c0_i32_1 = arith.constant 0 : i32
    return %c0_i32, %c0_i32_0 : i32, i32
  }
  func.func @transform_3(%arg0: i32) -> (i32, i32) {
    %c0_i32 = arith.constant 0 : i32
    %c0_i32_0 = arith.constant 0 : i32
    %c0_i32_1 = arith.constant 0 : i32
    return %c0_i32, %c0_i32_0 : i32, i32
  }
  func.func @transform_4(%arg0: i32) -> (i32, i32) {
    %c0_i32 = arith.constant 0 : i32
    %c0_i32_0 = arith.constant 0 : i32
    %c0_i32_1 = arith.constant 0 : i32
    return %c0_i32, %c0_i32_0 : i32, i32
  }
  func.func @transform_5(%arg0: i32) -> (i32, i32) {
    %c0_i32 = arith.constant 0 : i32
    %c0_i32_0 = arith.constant 0 : i32
    %c0_i32_1 = arith.constant 0 : i32
    return %c0_i32, %c0_i32_0 : i32, i32
  }
  func.func @transform_6(%arg0: i32) -> (i32, i32) {
    %c1_i32 = arith.constant 1 : i32
    %0 = arith.subi %arg0, %c1_i32 : i32
    %c0_i32 = arith.constant 0 : i32
    %1 = arith.maxsi %0, %c0_i32 : i32
    %c0_i32_0 = arith.constant 0 : i32
    %c0_i32_1 = arith.constant 0 : i32
    return %1, %c0_i32_0 : i32, i32
  }
  func.func @transform_7(%arg0: i32) -> (i32, i32) {
    %c0_i32 = arith.constant 0 : i32
    %c0_i32_0 = arith.constant 0 : i32
    %c0_i32_1 = arith.constant 0 : i32
    return %c0_i32, %c0_i32_0 : i32, i32
  }
  func.func @transform_8(%arg0: i32) -> (i32, i32) {
    %c0_i32 = arith.constant 0 : i32
    %c0_i32_0 = arith.constant 0 : i32
    %c0_i32_1 = arith.constant 0 : i32
    return %c0_i32, %c0_i32_0 : i32, i32
  }
  func.func @transform_9(%arg0: i32) -> (i32, i32) {
    %c0_i32 = arith.constant 0 : i32
    %c0_i32_0 = arith.constant 0 : i32
    %c0_i32_1 = arith.constant 0 : i32
    return %c0_i32, %c0_i32_0 : i32, i32
  }
  func.func @transform_10(%arg0: i32) -> (i32, i32) {
    %c0_i32 = arith.constant 0 : i32
    %c0_i32_0 = arith.constant 0 : i32
    %c0_i32_1 = arith.constant 0 : i32
    return %c0_i32, %c0_i32_0 : i32, i32
  }
  func.func @transform_11(%arg0: i32) -> (i32, i32) {
    %c0_i32 = arith.constant 0 : i32
    %0 = arith.minsi %arg0, %c0_i32 : i32
    %c0_i32_0 = arith.constant 0 : i32
    %c0_i32_1 = arith.constant 0 : i32
    return %0, %c0_i32_0 : i32, i32
  }
  func.func @transform_12(%arg0: i32) -> (i32, i32) {
    %c1_i32 = arith.constant 1 : i32
    %0 = arith.subi %arg0, %c1_i32 : i32
    %c0_i32 = arith.constant 0 : i32
    %1 = arith.maxsi %0, %c0_i32 : i32
    %c0_i32_0 = arith.constant 0 : i32
    %c0_i32_1 = arith.constant 0 : i32
    return %1, %c0_i32_0 : i32, i32
  }
}

</mosaic_0001>

<bundles_post_ra>
// kernel: tpu_custom_call.1
= control target key start
LH: loop header
LB: loop body
LE: loop exit
PB: predicated region body
PF: predicated region fallthrough
CT: control target
= control target key end

     0   :  { %s1907_s0 = inlined_call_operand.hbm [shape: f32[2], index: 0, kind: input, shape index: {}]   ;;  %s1908_s1 = inlined_call_operand.vmem [shape: f32[10,16], index: 1, kind: input, shape index: {}]   ;;  %s1909_s2 = inlined_call_operand.vmem [shape: bf16[16,128], index: 2, kind: input, shape index: {}]   ;;  %s1910_s3 = inlined_call_operand.hbm [shape: f32[1,128], index: 3, kind: input, shape index: {}]   ;;  %s1911_s4 = inlined_call_operand.hbm [shape: bf16[128,128], index: 4, kind: input, shape index: {}]   ;;  %s1912_s5 = inlined_call_operand.hbm [shape: f32[1,128], index: 5, kind: input, shape index: {}]   ;;  %s1913_s6 = inlined_call_operand.vmem [shape: f32[14,8], index: 6, kind: input, shape index: {}]   ;;  %s1914_s7 = inlined_call_operand.vmem [shape: bf16[8,128], index: 7, kind: input, shape index: {}]   ;;  %s1915_s8 = inlined_call_operand.vmem [shape: f32[1,128], index: 8, kind: input, shape index: {}]   ;;  %s1916_s9 = inlined_call_operand.hbm [shape: bf16[128,128], index: 9, kind: input, shape index: {}]   ;;  %s1917_s10 = inlined_call_operand.vmem [shape: f32[1,128], index: 10, kind: input, shape index: {}]   ;;  %s1918_s11 = inlined_call_operand.hbm [shape: bf16[10,128], index: 11, kind: output, shape index: {0}]   ;;  %s1919_s12 = inlined_call_operand.hbm [shape: bf16[14,128], index: 12, kind: output, shape index: {1}]  }
   0x1   :  { %1934 = sst [smem:[#allocation32_spill]] %s1907_s0 }
   0x2   :  { %1935 = sst [smem:[#allocation33_spill]] %s1908_s1 }
   0x3   :  { %1936 = sst [smem:[#allocation34_spill]] %s1909_s2 }
   0x4   :  { %1937 = sst [smem:[#allocation35_spill]] %s1910_s3 }
   0x5   :  { %1938 = sst [smem:[#allocation36_spill]] %s1911_s4 }
   0x6   :  { %1939 = sst [smem:[#allocation37_spill]] %s1919_s12 }
   0x7   :  { %18 = vsyncpa [#allocation5], 0 }
   0x8   :  { %19 = vsyncpa [#allocation3], 0 }
   0x9   :  { %20 = vsyncpa [#allocation8], 0 }
   0xa   :  { %21 = vsyncpa [#allocation11], 0 }
   0xb   :  { %22 = vsyncpa [#allocation4], 0 }
   0xc   :  { %24 = vsyncpa [#allocation4 + $0x1], 0 }
   0xd   :  { %25 = vsyncpa [#allocation14], 0 }
   0xe   :  { %27 = vsyncpa [#allocation14 + $0x1], 0  ;;  %s1649_s21 = smov 0   ;;  %s1651_s22 = smov 0  }
   0xf   :  { %s1653_s23 = smov 0   ;;  %s1655_s24 = smov 0  }
  0x10   :  { %s1657_s25 = smov 0   ;;  %s1659_s26 = smov 0  }
  0x11   :  { %s1661_s27 = smov 0  }
  0x12 LB: > { %1940 = sst [smem:[#allocation21_spill]] %s1549_s21  ;;  %s1685_s28 = sadd.s32 4294967295, %s1573_s27   ;;  %s1573_s27 = sphi %s1661_s27, %s1972_s27   ;;  %s1569_s26 = sphi %s1659_s26, %s1976_s26   ;;  %s1565_s25 = sphi %s1657_s25, %s1980_s25   ;;  %s1561_s24 = sphi %s1655_s24, %s1979_s24   ;;  %s1557_s23 = sphi %s1653_s23, %s1974_s23   ;;  %s1553_s22 = sphi %s1651_s22, %s1978_s22   ;;  %s1549_s21 = sphi %s1649_s21, %s1977_s21  }
  0x13   : > { %1941 = sst [smem:[#allocation22_spill]] %s1557_s23  ;;  %s1041_s29 = sadd.s32 4294967294, %s1573_s27  }
  0x14   : > { %1942 = sst [smem:[#allocation23_spill]] %s1561_s24  ;;  %s1689_s30 = sadd.s32 1, %s1573_s27  }
  0x15   : > { %1943 = sst [smem:[#allocation24_spill]] %s1569_s26  ;;  %p288_p0 = scmp.lt.s32.totalorder %s1573_s27, 0 }
  0x16   : > { %1944 = sst [smem:[#allocation25_spill]] %s1573_s27  ;;  %p290_p1 = scmp.lt.s32.totalorder %s1689_s30, 0 }
  0x17   : > { %1945 = sst [smem:[#allocation26_spill]] %s1689_s30  ;;  %s295_s13 = sadd.s32 1, %s1569_s26 }
  0x18   : > { %s289_s14 = scalar_select %p288_p0, %s1573_s27, 0 }
  0x19   : > { %s291_s15 = scalar_select %p290_p1, %s1689_s30, 0 }
  0x1a   : > { %p305_p2 = scmp.ne.s32.totalorder %s1569_s26, %s1565_s25  ;;  %p306_p3 = scmp.eq.s32.totalorder %s1685_s28, 1 }
  0x1b   : > { %s292_s16 = ssub.s32 %s289_s14, %s291_s15  ;;  %p311_p4 = scmp.ne.s32.totalorder %s1565_s25, %s1561_s24 }
  0x1c   : > { %p293_p5 = scmp.eq.s32.totalorder %s292_s16, 0  ;;  %p1703_p6 = por %p306_p3, %p305_p2 }
  0x1d   : > { %p312_p7 = scmp.eq.s32.totalorder %s1041_s29, 1  ;;  %p319_p8 = scmp.gt.s32.totalorder %s1685_s28, 0 }
  0x1e   : > { %s1709_s18 = scalar_select %p293_p5, %s1569_s26, %s295_s13  }
  0x1f   : > { %p1711_p9 = por %p312_p7, %p311_p4  ;;  %s1045_s20 = sadd.s32 4294967295, %s1689_s30 }
  0x20   : > { %1947 = sst [smem:[#allocation27_spill]] %s1709_s18  ;;  %p322_p10 = scmp.gt.s32.totalorder %s1045_s20, 0 }
  0x21   : > { %s1948_s19 = scalar_select %p1711_p9, 1, 0 }
  0x22   : > { %s320_s14 = scalar_select %p319_p8, %s1685_s28, 0 }
  0x23   : > { %1949 = sst [smem:[#allocation28_spill]] %s1948_s19  ;;  %s327_s15 = sadd.s32 1, %s1557_s23 }
  0x24   : > { %p337_p11 = scmp.ne.s32.totalorder %s1557_s23, %s1553_s22  ;;  %p343_p12 = scmp.ne.s32.totalorder %s1553_s22, %s1549_s21 }
  0x25   : > { %s1982_s20 = smov (!%p322_p10, %s1045_s20), 0  ;;  %p1046_p1 = scmp.ge.s32.totalorder %s1573_s27, 1 }
  0x26   : > { %p1724_p13 = por %p337_p11, %p306_p3  ;;  %p1728_p0 = por %p343_p12, %p312_p7 }
  0x27   : > { %s324_s16 = ssub.s32 %s320_s14, %s1982_s20  ;;  %p351_p4 = scmp.lt.s32.totalorder %s1573_s27, 3 }
  0x28   : > { %s1950_s29 = scalar_select %p1724_p13, 1, 0 }
  0x29   : > { %s1952_s13 = scalar_select %p1728_p0, 1, 0 }
  0x2a   : > { %1951 = sst [smem:[#allocation29_spill]] %s1950_s29  ;;  %p325_p2 = scmp.eq.s32.totalorder %s324_s16, 0 }
  0x2b   : > { %1953 = sst [smem:[#allocation30_spill]] %s1952_s13  ;;  %p1224_p5 = scmp.eq.s32.totalorder %s1685_s28, 0 }
  0x2c   : > { %s1736_s18 = scalar_select %p325_p2, %s1557_s23, %s327_s15  }
  0x2d   : > { %p1738_p8 = pnand %p1046_p1, %p351_p4  ;;  %s1956_s4 = sld [smem:[#allocation36_spill]] }
  0x2e   : > { %1954 = sst [smem:[#allocation31_spill]] %s1736_s18  ;;  %s1575_s13 = smov [#allocation7]  }
  0x2f   : > { %p1201_p3 = pneg %p1738_p8  ;;  %s389_s20 = sshll.u32 %s1575_s13, 4  ;;  %s390_s20 = int_to_ptr.vmem [resolvable:$true] %s389_s20 }
  0x30   : > { %s1958_s0 = sld [smem:[#allocation32_spill]]  ;;  %s1576_s30 = smov 64  }
  0x31   : > { %p1749_p7 = pnand %p1224_p5, %p1201_p3  ;;  %s1578_s13 = smov [#allocation2]  }
  0x32   : > { %s1959_s3 = sld [smem:[#allocation35_spill]]  ;;  %s1579_s15 = smov [#allocation6]  }
  0x33   : > { %s387_s19 = sshll.u32 %s1956_s4, 4  ;;  %s1577_s4 = smov 4   ;;  %s388_s19 = int_to_ptr.hbm [resolvable:$true] %s387_s19 }
  0x34   : > { %1210 = dma.hbm_to_vmem [thread:$0]  (!%p1749_p7), %s388_s19, 1024, %s390_s20, [#allocation8], %s1576_s30, %s1576_s30, %s1577_s4  }
  0x35   : > { %s378_s16 = sshll.u32 %s1579_s15, 4  ;;  %s402_s12 = sshll.u32 %s1912_s5, 4  ;;  %s379_s16 = int_to_ptr.vmem [resolvable:$true] %s378_s16  ;;  %s403_s12 = int_to_ptr.hbm [resolvable:$true] %s402_s12 }
  0x36   : > { %s363_s21 = sshll.u32 %s1958_s0, 4  ;;  %s1580_s19 = smov [#allocation9]   ;;  %s364_s21 = int_to_ptr.hbm [resolvable:$true] %s363_s21 }
  0x37   : > { %1204 = dma.hbm_to_smem (!%p1749_p7), %s364_s21, 16, %s1578_s13, [#allocation5]  }
  0x38   : > { %s376_s24 = sshll.u32 %s1959_s3, 4  ;;  %s404_s20 = sshll.u32 %s1580_s19, 4  ;;  %s377_s24 = int_to_ptr.hbm [resolvable:$true] %s376_s24  ;;  %s405_s20 = int_to_ptr.vmem [resolvable:$true] %s404_s20 }
  0x39   : > { %1207 = dma.hbm_to_vmem [thread:$0]  (!%p1749_p7), %s377_s24, 16, %s379_s16, [#allocation3]  }
  0x3a   : > { %s419_s13 = sshll.u32 %s1916_s9, 4  ;;  %s1581_s23 = smov [#allocation10]   ;;  %s420_s13 = int_to_ptr.hbm [resolvable:$true] %s419_s13 }
  0x3b   : > { %1213 = dma.hbm_to_vmem [thread:$0]  (!%p1749_p7), %s403_s12, 16, %s405_s20, [#allocation8]  }
  0x3c   : > { %s421_s18 = sshll.u32 %s1581_s23, 4  ;;  %468 = sbr.rel (%p1738_p8) target bundleno = 705 (0x2c1), region = 64  ;;  %s422_s18 = int_to_ptr.vmem [resolvable:$true] %s421_s18 }
  0x3d   : > { %1216 = dma.hbm_to_vmem [thread:$0]  (!%p1749_p7), %s420_s13, 1024, %s422_s18, [#allocation11], %s1576_s30, %s1576_s30, %s1577_s4  }
  0x41   : > { %1524 = dma.done.wait (%p1224_p5), [#allocation5], 16  }
  0x42   : > { %1526 = vsyncadd (%p1224_p5), [#allocation5], 4294967280 }
  0x43   : > { %1528 = dma.done.wait (%p1224_p5), [#allocation3], 16  }
  0x44   : > { %1530 = vsyncadd (%p1224_p5), [#allocation3], 4294967280 }
  0x45   : > { %1532 = dma.done.wait (%p1224_p5), [#allocation8], 1040  }
  0x46   : > { %1534 = vsyncadd (%p1224_p5), [#allocation8], 4294966256 }
  0x47   : > { %1536 = dma.done.wait (%p1224_p5), [#allocation11], 1024  }
  0x48   : > { %1538 = vsyncadd (%p1224_p5), [#allocation11], 4294966272 }
  0x49   : > { %495 = sfence }
  0x4a   : > { %s1933_s0 = sand.u32 1, %s1565_s25   ;;  %s1932_s4 = sand.u32 1, %s1553_s22  }
  0x4b   : > { %s1797_s12 = sshll.u32 %s1933_s0, 3  ;;  %s1801_s24 = sshll.u32 %s1932_s4, 3 }
  0x4c   : > { %p547_p10 = scmp.lt.s32.totalorder %s1685_s28, 0  ;;  %s1063_s26 = sadd.s32 4294967295, %s1685_s28 }
  0x4d   : > { %p558_p11 = scmp.gt.s32.totalorder %s1063_s26, 0  ;;  %s1960_s1 = sld [smem:[#allocation33_spill]] }
  0x4e   : > { %s1806_s27 = scalar_select %p547_p10, %s1685_s28, 0 }
  0x4f   : > { %s1984_s26 = smov (!%p558_p11, %s1063_s26), 0  ;;  %s539_s18 = scalar_lea.vmem [#allocation12], %s1797_s12 }
  0x50   : > { %s1061_s29 = sshll.u32 %s1806_s27, 1  ;;  %s1064_s14 = sshll.u32 %s1984_s26, 1 }
  0x51   : > { %p550_p12 = scmp.lt.s32.totalorder %s1061_s29, 1  ;;  %p561_p1 = scmp.lt.s32.totalorder %s1064_s14, 1 }
  0x52   : > { %s546_s4 = scalar_lea.vmem [#allocation13], %s1801_s24  ;;  %p1066_p2 = scmp.ge.s32.totalorder %s1685_s28, 1 }
  0x53   : > { %s1986_s29 = smov (!%p550_p12, %s1061_s29), 1  ;;  %s1988_s14 = smov (!%p561_p1, %s1064_s14), 1 }
  0x54   : > { %s1062_s30 = sshll.u32 %s1986_s29, 3  ;;  %s1065_s20 = sshll.u32 %s1988_s14, 3 }
  0x55   : > { %s553_s19 = scalar_lea.vmem %s1960_s1, %s1062_s30  ;;  %s1818_s23 = scalar_lea.vmem %s1913_s6, %s1065_s20 }
  0x56   : > { %580 = sbr.rel (%p1066_p2) target bundleno = 376 (0x178), region = 88  ;;  %s1961_s2 = sld [smem:[#allocation34_spill]] (!%p1066_p2) }
  0x57   : > { %s581_s3 = sld [smem:[#allocation2]] (!%p1066_p2) }
  0x5b   : > { %v582_v1 = vld [vmem:[%s553_s19] sm:$0xff]  ;;  %v583_v2 = vld [vmem:[%s553_s19 + $0x8] sm:$0xff]  ;;  %vm597_vm0 = vcmask 130048   ;;  %v1155_v5 = vld [vmem:[#allocation7 + $0x30] sm:$0xff] }
  0x5c   : > { %v1148_v0 = vld [vmem:[%s1961_s2] sm:$0xff]  ;;  %v584_v3 = vpack.c.bf16 %v583_v2, %v582_v1  ;;  %v1154_v6 = vld [vmem:[#allocation7 + $0x28] sm:$0xff]  ;;  %v1151_v9 = vld [vmem:[#allocation7 + $0x10] sm:$0xff] }
  0x5d   : > { %v1156_v4 = vld [vmem:[#allocation7 + $0x38] sm:$0xff]  ;;  %608 = vmatpush.bf16.msra.mxu0 %v1148_v0  ;;  %v1153_v7 = vld [vmem:[#allocation7 + $0x20] sm:$0xff]  ;;  %v1150_v10 = vld [vmem:[#allocation7 + $0x8] sm:$0xff]  ;;  %v617_v15 = vstv %s581_s3 }
  0x5e   : > { %691 = vmatpush.bf16.msra.mxu1 %v1156_v4  ;;  %v1152_v8 = vld [vmem:[#allocation7 + $0x18] sm:$0xff]  ;;  %v1149_v11 = vld [vmem:[#allocation7] sm:$0xff] }
  0x5f   : > { %v1300_v13 = vld [vmem:[#allocation6] ss:$0 sm:$0xff]  ;;  %v1301_v24 = vld [vmem:[#allocation9] ss:$0 sm:$0xff] }
  0x60   : > { %1071 = vmatmul.msk.bf16.vlgmr.msra.gmra.mxu0 %vm597_vm0, %v584_v3 }
  0x62   : > { %692 = vmatpush.bf16.msra.mxu1 %v1155_v5 }
  0x66   : > { %693 = vmatpush.bf16.msra.mxu1 %v1154_v6 }
  0x6a   : > { %694 = vmatpush.bf16.msra.mxu1 %v1153_v7 }
  0x6e   : > { %695 = vmatpush.bf16.msra.mxu1 %v1152_v8 }
  0x72   : > { %696 = vmatpush.bf16.msra.mxu1 %v1151_v9 }
  0x76   : > { %697 = vmatpush.bf16.msra.mxu1 %v1150_v10 }
  0x7a   : > { %698 = vmatpush.bf16.msra.mxu1 %v1149_v11 }
  0xdd   : > { %v610_v12 = vpop.f32.mrf.mxu0 }
  0xde   : > { %v611_v14 = vadd.f32 %v1300_v13, %v610_v12 }
  0xe0   : > { %v618_v17 = vmul.f32 %v617_v15, %v611_v14  ;;  %vm615_vm1 = vcmp.ge.f32.partialorder %v611_v14, 0.0 }
  0xe2   : > { %v620_v20 = vsel %vm615_vm1, %v611_v14, %v618_v17 }
  0xe5   : > { %v612_v16 = vpop.f32.mrf.mxu0 }
  0xe6   : > { %v613_v18 = vadd.f32 %v1300_v13, %v612_v16 }
  0xe8   : > { %v619_v19 = vmul.f32 %v617_v15, %v613_v18  ;;  %vm616_vm2 = vcmp.ge.f32.partialorder %v613_v18, 0.0 }
  0xea   : > { %v621_v21 = vsel %vm616_vm2, %v613_v18, %v619_v19 }
  0xeb   : > { %v622_v22 = vpack.c.bf16 %v621_v21, %v620_v20 }
  0xed   : > { %699 = vmatmul.bf16.vlgmr.msra.gmra.mxu1 %v622_v22 }
 0x16a   : > { %v700_v23 = vpop.f32.mrf.mxu1 }
 0x16b   : > { %v701_v26 = vadd.f32 %v1301_v24, %v700_v23 }
 0x172   : > { %v702_v25 = vpop.f32.mrf.mxu1 }
 0x173   : > { %v703_v27 = vadd.f32 %v1301_v24, %v702_v25 }
 0x175   : > { %v1170_v28 = vpack.c.bf16 %v703_v27, %v701_v26 }
 0x177   : > { %1171 = vst [vmem:[%s539_s18] sm:$0xff] %v1170_v28  }
 0x178 PF: > { %p1104_p4 = scmp.lt.s32.totalorder %s1685_s28, 1 }
 0x179   : > { %s1105_s28 = sld [smem:[#allocation2 + $0x1]] (!%p1104_p4) }
 0x17a   : > { %712 = sbr.rel (%p1104_p4) target bundleno = 668 (0x29c), region = 92 }
 0x17f   : > { %v717_v29 = vld [vmem:[%s1914_s7] sm:$0xf]  ;;  %vm726_vm3 = vcmask 1043456   ;;  %v715_v31 = vld [vmem:[%s1818_s23 + $0x8] sm:$0xff]  ;;  %vm722_vm4 = vcmask 64512   ;;  %v1163_v35 = vld [vmem:[#allocation10 + $0x30] sm:$0xff]  ;;  %v746_v45 = vstv %s1105_s28 }
 0x180   : > { %v714_v30 = vld [vmem:[%s1818_s23] sm:$0xff]  ;;  %v728_v32 = vsel %vm726_vm3, %v717_v29, 0  ;;  %v1162_v36 = vld [vmem:[#allocation10 + $0x28] sm:$0xff]  ;;  %v1159_v39 = vld [vmem:[#allocation10 + $0x10] sm:$0xff] }
 0x181   : > { %v716_v33 = vpack.c.bf16 %v715_v31, %v714_v30  ;;  %v1164_v34 = vld [vmem:[#allocation10 + $0x38] sm:$0xff]  ;;  %737 = vmatpush.bf16.msra.mxu0 %v728_v32  ;;  %v1161_v37 = vld [vmem:[#allocation10 + $0x20] sm:$0xff]  ;;  %v1158_v40 = vld [vmem:[#allocation10 + $0x8] sm:$0xff] }
 0x182   : > { %820 = vmatpush.bf16.msra.mxu1 %v1164_v34  ;;  %v1160_v38 = vld [vmem:[#allocation10 + $0x18] sm:$0xff]  ;;  %v1157_v41 = vld [vmem:[#allocation10] sm:$0xff] }
 0x183   : > { %v1302_v43 = vld [vmem:[%s1915_s8] ss:$0 sm:$0xff] }
 0x184   : > { %1106 = vmatmul.msk.bf16.vlgmr.msra.gmra.mxu0 %vm722_vm4, %v716_v33  ;;  %v1303_v54 = vld [vmem:[%s1917_s10] ss:$0 sm:$0xff] }
 0x186   : > { %821 = vmatpush.bf16.msra.mxu1 %v1163_v35 }
 0x18a   : > { %822 = vmatpush.bf16.msra.mxu1 %v1162_v36 }
 0x18e   : > { %823 = vmatpush.bf16.msra.mxu1 %v1161_v37 }
 0x192   : > { %824 = vmatpush.bf16.msra.mxu1 %v1160_v38 }
 0x196   : > { %825 = vmatpush.bf16.msra.mxu1 %v1159_v39 }
 0x19a   : > { %826 = vmatpush.bf16.msra.mxu1 %v1158_v40 }
 0x19e   : > { %827 = vmatpush.bf16.msra.mxu1 %v1157_v41 }
 0x201   : > { %v739_v42 = vpop.f32.mrf.mxu0 }
 0x202   : > { %v740_v44 = vadd.f32 %v1302_v43, %v739_v42 }
 0x204   : > { %v747_v47 = vmul.f32 %v746_v45, %v740_v44  ;;  %vm744_vm5 = vcmp.ge.f32.partialorder %v740_v44, 0.0 }
 0x206   : > { %v749_v50 = vsel %vm744_vm5, %v740_v44, %v747_v47 }
 0x209   : > { %v741_v46 = vpop.f32.mrf.mxu0 }
 0x20a   : > { %v742_v48 = vadd.f32 %v1302_v43, %v741_v46 }
 0x20c   : > { %v748_v49 = vmul.f32 %v746_v45, %v742_v48  ;;  %vm745_vm6 = vcmp.ge.f32.partialorder %v742_v48, 0.0 }
 0x20e   : > { %v750_v51 = vsel %vm745_vm6, %v742_v48, %v748_v49 }
 0x20f   : > { %v751_v52 = vpack.c.bf16 %v750_v51, %v749_v50 }
 0x211   : > { %828 = vmatmul.bf16.vlgmr.msra.gmra.mxu1 %v751_v52 }
 0x28e   : > { %v829_v53 = vpop.f32.mrf.mxu1 }
 0x28f   : > { %v830_v56 = vadd.f32 %v1303_v54, %v829_v53 }
 0x296   : > { %v831_v55 = vpop.f32.mrf.mxu1 }
 0x297   : > { %v832_v57 = vadd.f32 %v1303_v54, %v831_v55 }
 0x299   : > { %v1175_v58 = vpack.c.bf16 %v832_v57, %v830_v56 }
 0x29b   : > { %1176 = vst [vmem:[%s546_s4] sm:$0xff] %v1175_v58  }
 0x29c PF: > { %s1165_s19 = sshll.u32 %s1806_s27, 3  ;;  %s858_s23 = sshll.u32 %s539_s18, 4  ;;  %s859_s23 = int_to_ptr.vmem [resolvable:$true] %s858_s23 }
 0x29d   : > { %s857_s13 = scalar_lea.hbm %s1918_s11, %s1165_s19  ;;  %s1962_s0 = sand.u32 1, %s1565_s25  }
 0x29e   : > { %s860_s3 = sshll.u32 %s857_s13, 4  ;;  %s839_s29 = scalar_lea.sflag [#allocation4], %s1962_s0  ;;  %s861_s3 = int_to_ptr.hbm [resolvable:$true] %s860_s3 }
 0x29f   : > { %s1453_s28 = sshra.s32 %s861_s3, 4  ;;  %s1459_s15 = scalar_lea.hbm %s1918_s11, 8  ;;  %s1454_s28 = int_to_ptr.hbm [resolvable:$true] %s1453_s28 }
 0x2a0   : > { %s1455_s14 = scalar_lea.hbm %s1454_s28, 8  ;;  %p1460_p7 = scmp.lt.s32.totalorder %s1454_s28, %s1918_s11 }
 0x2a1   : > { %p1456_p5 = scmp.ne.s32.totalorder %s1454_s28, %s1455_s14  ;;  %p1461_p10 = scmp.lt.s32.totalorder %s1459_s15, %s1455_s14 }
 0x2a3   : > { %p1457_p8 = pnand %p1456_p5, %p1703_p6  ;;  %p1462_p11 = por %p1461_p10, %p1460_p7 }
 0x2a5   : > { %p1458_p3 = pneg %p1457_p8 }
 0x2a7   : > { %p1463_p12 = pnand %p1462_p11, %p1458_p3 }
 0x2a9   : > { %1466 = shalt.err (!%p1463_p12)
}
 0x2aa   : > { %s1582_s12 = smov 64   ;;  %s1583_s20 = smov 4  }
 0x2ab   : > { %1197 = dma.vmem_to_hbm [thread:$0]  (%p1703_p6), %s859_s23, 128, %s861_s3, %s839_s29, %s1582_s12, %s1582_s12, %s1583_s20  }
 0x2ac   : > { %s1166_s21 = sshll.u32 %s1984_s26, 3  ;;  %s878_s13 = sshll.u32 %s546_s4, 4  ;;  %s879_s13 = int_to_ptr.vmem [resolvable:$true] %s878_s13 }
 0x2ad   : > { %s1964_s27 = sld [smem:[#allocation37_spill]]  ;;  %s1966_s15 = sand.u32 1, %s1553_s22  }
 0x2ae   : > { %s844_s19 = scalar_lea.sflag [#allocation14], %s1966_s15 }
 0x2b3   : > { %s1965_s16 = smov %s1964_s27  ;;  %s877_s28 = scalar_lea.hbm %s1964_s27, %s1166_s21 }
 0x2b4   : > { %s880_s14 = sshll.u32 %s877_s28, 4  ;;  %s1487_s4 = scalar_lea.hbm %s1965_s16, 8  ;;  %s881_s14 = int_to_ptr.hbm [resolvable:$true] %s880_s14 }
 0x2b5   : > { %s1481_s1 = sshra.s32 %s881_s14, 4  ;;  %s1482_s1 = int_to_ptr.hbm [resolvable:$true] %s1481_s1 }
 0x2b6   : > { %s1483_s2 = scalar_lea.hbm %s1482_s1, 8  ;;  %p1488_p6 = scmp.lt.s32.totalorder %s1482_s1, %s1965_s16 }
 0x2b7   : > { %p1484_p1 = scmp.ne.s32.totalorder %s1482_s1, %s1483_s2  ;;  %p1489_p5 = scmp.lt.s32.totalorder %s1487_s4, %s1483_s2 }
 0x2b9   : > { %p1485_p2 = pnand %p1484_p1, %p1724_p13  ;;  %p1490_p8 = por %p1489_p5, %p1488_p6 }
 0x2bb   : > { %p1486_p4 = pneg %p1485_p2 }
 0x2bd   : > { %p1491_p3 = pnand %p1490_p8, %p1486_p4 }
 0x2bf   : > { %1494 = shalt.err (!%p1491_p3)
}
 0x2c0   : > { %1198 = dma.vmem_to_hbm [thread:$0]  (%p1724_p13), %s879_s13, 128, %s881_s14, %s844_s19, %s1582_s12, %s1582_s12, %s1583_s20  }
 0x2c1 PF: > { %s1967_s3 = sld [smem:[#allocation25_spill]] }
 0x2c2   : > { %s1968_s29 = sld [smem:[#allocation23_spill]] }
 0x2c7   : > { %p1234_p7 = scmp.ge.s32.totalorder %s1967_s3, 2 }
 0x2c8   : > { %s895_s0 = sand.u32 1, %s1968_s29  }
 0x2c9   : > { %p1218_p10 = pnand %p1234_p7, %p1711_p9  ;;  %s896_s30 = scalar_lea.sflag [#allocation4], %s895_s0 }
 0x2cb   : > { %p1219_p11 = pneg %p1218_p10 }
 0x2cd   : > { %1540 = dma.done.wait (%p1219_p11), %s896_s30, 128  }
 0x2ce   : > { %1542 = vsyncadd (%p1219_p11), %s896_s30, 4294967168  ;;  %s1970_s1 = sld [smem:[#allocation21_spill]]  ;;  %p1221_p12 = pnand %p1234_p7, %p1728_p0 }
 0x2d0   : > { %p1222_p1 = pneg %p1221_p12 }
 0x2d4   : > { %s905_s27 = sand.u32 1, %s1970_s1  }
 0x2d5   : > { %s906_s18 = scalar_lea.sflag [#allocation14], %s905_s27 }
 0x2d6   : > { %1544 = dma.done.wait (%p1222_p1), %s906_s18, 128  }
 0x2d7   : > { %1546 = vsyncadd (%p1222_p1), %s906_s18, 4294967168  ;;  %s1972_s27 = sld [smem:[#allocation26_spill]]  ;;  %s1977_s21 = smov %s1553_s22 }
 0x2d8   : > { %s1973_s12 = sld [smem:[#allocation22_spill]]  ;;  %s1979_s24 = smov %s1565_s25 }
 0x2d9   : > { %s1974_s23 = sld [smem:[#allocation31_spill]] }
 0x2da   : > { %s1975_s20 = sld [smem:[#allocation24_spill]] }
 0x2db   : > { %s1976_s26 = sld [smem:[#allocation27_spill]] }
 0x2dd   : > { %p30_p9 = scmp.ge.s32.totalorder %s1972_s27, 4  }
 0x2de   : > { %s1978_s22 = smov %s1973_s12 }
 0x2df   :  { %32 = sbr.rel (!%p30_p9) target bundleno = 18 (0x12), region = 149 }
 0x2e0   : > { %s1980_s25 = smov %s1975_s20 }
 0x2e4   :  { %912 = vsyncpa [#allocation3], 1 }
 0x2e5   :  { %914 = vsyncpa [#allocation3 + $0x1], 1 }
 0x2e6   :  { %915 = vsyncpa [#allocation8], 1 }
 0x2e7   :  { %916 = vsyncpa [#allocation11], 1 }
 0x2e8   :  { %917 = vsyncpa [#allocation4], 1 }
 0x2e9   :  { %919 = vsyncpa [#allocation4 + $0x1], 1 }
 0x2ea   :  { %920 = vsyncpa [#allocation14], 1 }
 0x2eb   :  { %922 = vsyncpa [#allocation14 + $0x1], 1 }
 0x2ec   :  { %923 = vsyncpa [#allocation5], 1 }
 0x2ed   :  { %925 = vsyncpa [#allocation5 + $0x1], 1 }

</bundles_post_ra>
